<compile_context>
chip_gen: v6e
topology: v6e:2x2x1
jax: 0.10.0
libtpu: 0.0.40
codegen_flags: <defaults>
</compile_context>

<pallas_src>
import jax
import jax.numpy as jnp
from jax.experimental import pallas as pl
from jax.experimental.pallas import tpu as pltpu

_HIDDEN = 64
_LANE = 128


def _round_up(x, m):
    return (x + m - 1) // m * m


def actor_kernel(x_ref, w1_ref, b1_ref, w2_ref, b2_ref, w3_ref, b3_ref,
                 mu_ref):
    """One batch tile: three small matmuls + tanh, lane-dense mu store."""
    x = x_ref[...]

    # Layer 1: Linear(input_dim, 64) + tanh (MXU matmul, f32 accumulate;
    # bias + tanh kept in f32 — v5e's VPU/EUP has no bf16 path).
    h1 = jnp.tanh(
        jnp.dot(x, w1_ref[...], preferred_element_type=jnp.float32)
        + b1_ref[...])

    # Layer 2: Linear(64, 64) + tanh
    h2 = jnp.tanh(
        jnp.dot(h1.astype(x.dtype), w2_ref[...],
                preferred_element_type=jnp.float32)
        + b2_ref[...])

    # mu head: Linear(64, out_pad) — out dim is padded to a multiple of 128
    # in the wrapper so this store is lane-dense (no masked vst).
    mu = (jnp.dot(h2.astype(x.dtype), w3_ref[...],
                  preferred_element_type=jnp.float32)
          + b3_ref[...])
    mu_ref[...] = mu.astype(mu_ref.dtype)


def actor_network_forward(x, params, *, block_b=512,
                          compute_dtype=jnp.float32):
    """x: [B, input_dim].  params: dict from init_params.

    compute_dtype=jnp.bfloat16 halves HBM read traffic of the batch stream at
    large B (accumulation stays f32); the default keeps everything f32.
    """
    B, in_dim = x.shape
    out_dim = params["w3"].shape[1]
    out_pad = _round_up(out_dim, _LANE)

    # Pad the mu head to a 128-lane slab (zero columns are sliced off below).
    w3p = jnp.zeros((_HIDDEN, out_pad), params["w3"].dtype)
    w3p = w3p.at[:, :out_dim].set(params["w3"])
    b3p = jnp.zeros((1, out_pad), params["b3"].dtype)
    b3p = b3p.at[:, :out_dim].set(params["b3"])

    # Batch tile: big enough to amortize per-grid-step overhead, small enough
    # that 2x(x tile) + 2x(mu tile) + params stays far below v7x's 64 MiB VMEM.
    tb = min(block_b, _round_up(B, 8))
    b_pad = _round_up(B, tb)
    if b_pad != B:
        x = jnp.pad(x, ((0, b_pad - B), (0, 0)))

    xc = x.astype(compute_dtype)
    w1 = params["w1"].astype(compute_dtype)
    w2 = params["w2"].astype(compute_dtype)
    w3p = w3p.astype(compute_dtype)

    grid = (b_pad // tb,)

    mu_full = pl.pallas_call(
        actor_kernel,
        out_shape=jax.ShapeDtypeStruct((b_pad, out_pad), jnp.float32),
        grid=grid,
        in_specs=[
            # batch stream: moves with the grid
            pl.BlockSpec((tb, in_dim), lambda i: (i, 0)),
            # parameters: VMEM-resident across all grid steps
            pl.BlockSpec((in_dim, _HIDDEN), lambda i: (0, 0)),
            pl.BlockSpec((1, _HIDDEN), lambda i: (0, 0)),
            pl.BlockSpec((_HIDDEN, _HIDDEN), lambda i: (0, 0)),
            pl.BlockSpec((1, _HIDDEN), lambda i: (0, 0)),
            pl.BlockSpec((_HIDDEN, out_pad), lambda i: (0, 0)),
            pl.BlockSpec((1, out_pad), lambda i: (0, 0)),
        ],
        out_specs=pl.BlockSpec((tb, out_pad), lambda i: (i, 0)),
        compiler_params=pltpu.CompilerParams(
            dimension_semantics=("parallel",)),
    )(xc, w1, params["b1"], w2, params["b2"], w3p, b3p)

    mu = mu_full[:B, :out_dim]

    # sigma does not depend on x: exp + broadcast outside the kernel
    # (matches torch.exp(log_sigma.expand_as(mu)) exactly).
    sigma = jnp.broadcast_to(jnp.exp(params["log_sigma"]), mu.shape)
    return mu, sigma


def init_params(key, input_dim, output_dim, hidden=_HIDDEN):
    """Deterministic synthetic init (PyTorch-style uniform fan-in bound).

    Weights are stored [in_features, out_features] (transposed from
    nn.Linear's [out, in]) so the kernel computes x @ W + b.
    """
    ks = jax.random.split(key, 6)

    def linear(kw, kb, fan_in, fan_out):
        bound = 1.0 / jnp.sqrt(fan_in)
        w = jax.random.uniform(kw, (fan_in, fan_out), jnp.float32,
                               minval=-bound, maxval=bound)
        b = jax.random.uniform(kb, (1, fan_out), jnp.float32,
                               minval=-bound, maxval=bound)
        return w, b

    w1, b1 = linear(ks[0], ks[1], input_dim, hidden)
    w2, b2 = linear(ks[2], ks[3], hidden, hidden)
    w3, b3 = linear(ks[4], ks[5], hidden, output_dim)
    log_sigma = jnp.zeros((1, output_dim), jnp.float32)  # nn.Parameter(zeros)

    return {"w1": w1, "b1": b1, "w2": w2, "b2": b2,
            "w3": w3, "b3": b3, "log_sigma": log_sigma}


if __name__ == "__main__":
    key = jax.random.PRNGKey(0)
    k_param, k_x = jax.random.split(key)

    batch, input_dim, output_dim = 8, 16, 8
    params = init_params(k_param, input_dim, output_dim)
    x = jax.random.normal(k_x, (batch, input_dim), jnp.float32)

    mu, sigma = actor_network_forward(x, params)
    jax.block_until_ready((mu, sigma))

    # Reference check in plain JAX (same math) to validate the kernel.
    h1 = jnp.tanh(x @ params["w1"] + params["b1"])
    h2 = jnp.tanh(h1 @ params["w2"] + params["b2"])
    mu_ref = h2 @ params["w3"] + params["b3"]
    sigma_ref = jnp.broadcast_to(jnp.exp(params["log_sigma"]), mu_ref.shape)
    assert mu.shape == mu_ref.shape and sigma.shape == sigma_ref.shape
    assert jnp.allclose(mu, mu_ref, atol=1e-5, rtol=1e-5)
    assert jnp.allclose(sigma, sigma_ref, atol=1e-6, rtol=1e-6)

    print("KERNEL_OK")
</pallas_src>

<mosaic_0001>
module attributes {stable_mosaic.version = 11 : i64} {
  func.func @actor_kernel(%arg0: i32, %arg1: memref<8x16xf32, #tpu.memory_space<vmem>>, %arg2: memref<16x64xf32, #tpu.memory_space<vmem>>, %arg3: memref<1x64xf32, #tpu.memory_space<vmem>>, %arg4: memref<64x64xf32, #tpu.memory_space<vmem>>, %arg5: memref<1x64xf32, #tpu.memory_space<vmem>>, %arg6: memref<64x128xf32, #tpu.memory_space<vmem>>, %arg7: memref<1x128xf32, #tpu.memory_space<vmem>>, %arg8: memref<8x128xf32, #tpu.memory_space<vmem>>) attributes {dimension_semantics = [#tpu.dimension_semantics<parallel>], iteration_bounds = array<i64: 1>, scalar_prefetch = 0 : i64, scratch_operands = 0 : i64, tpu.core_type = #tpu.core_type<tc>, window_params = [{transform_indices = @transform_0, window_bounds = array<i64: 8, 16>}, {pipeline_mode = #tpu.pipeline_mode<synchronous>, transform_indices = @transform_1, window_bounds = array<i64: 16, 64>}, {pipeline_mode = #tpu.pipeline_mode<synchronous>, transform_indices = @transform_2, window_bounds = array<i64: 1, 64>}, {pipeline_mode = #tpu.pipeline_mode<synchronous>, transform_indices = @transform_3, window_bounds = array<i64: 64, 64>}, {pipeline_mode = #tpu.pipeline_mode<synchronous>, transform_indices = @transform_4, window_bounds = array<i64: 1, 64>}, {pipeline_mode = #tpu.pipeline_mode<synchronous>, transform_indices = @transform_5, window_bounds = array<i64: 64, 128>}, {pipeline_mode = #tpu.pipeline_mode<synchronous>, transform_indices = @transform_6, window_bounds = array<i64: 1, 128>}, {transform_indices = @transform_7, window_bounds = array<i64: 8, 128>}]} {
    %c0 = arith.constant 0 : index
    %c0_0 = arith.constant 0 : index
    %0 = vector.load %arg1[%c0, %c0_0] : memref<8x16xf32, #tpu.memory_space<vmem>>, vector<8x16xf32>
    %c0_1 = arith.constant 0 : index
    %c0_2 = arith.constant 0 : index
    %1 = vector.load %arg2[%c0_1, %c0_2] : memref<16x64xf32, #tpu.memory_space<vmem>>, vector<16x64xf32>
    %cst = arith.constant dense<0.000000e+00> : vector<8x64xf32>
    %2 = tpu.matmul %0, %1, %cst {dimension_numbers = #tpu.dot_dimension_numbers<[1], [0], [0], [1], [0, 0, 1, 1], [], []>} : vector<8x16xf32>, vector<16x64xf32>, vector<8x64xf32> -> vector<8x64xf32>
    %c0_3 = arith.constant 0 : index
    %c0_4 = arith.constant 0 : index
    %3 = vector.load %arg3[%c0_3, %c0_4] : memref<1x64xf32, #tpu.memory_space<vmem>>, vector<1x64xf32>
    %4 = vector.broadcast %3 : vector<1x64xf32> to vector<8x64xf32>
    %5 = arith.addf %2, %4 : vector<8x64xf32>
    %6 = math.tanh %5 : vector<8x64xf32>
    %c0_5 = arith.constant 0 : index
    %c0_6 = arith.constant 0 : index
    %7 = vector.load %arg4[%c0_5, %c0_6] : memref<64x64xf32, #tpu.memory_space<vmem>>, vector<64x64xf32>
    %cst_7 = arith.constant dense<0.000000e+00> : vector<8x64xf32>
    %8 = tpu.matmul %6, %7, %cst_7 {dimension_numbers = #tpu.dot_dimension_numbers<[1], [0], [0], [1], [0, 0, 1, 1], [], []>} : vector<8x64xf32>, vector<64x64xf32>, vector<8x64xf32> -> vector<8x64xf32>
    %c0_8 = arith.constant 0 : index
    %c0_9 = arith.constant 0 : index
    %9 = vector.load %arg5[%c0_8, %c0_9] : memref<1x64xf32, #tpu.memory_space<vmem>>, vector<1x64xf32>
    %10 = vector.broadcast %9 : vector<1x64xf32> to vector<8x64xf32>
    %11 = arith.addf %8, %10 : vector<8x64xf32>
    %12 = math.tanh %11 : vector<8x64xf32>
    %c0_10 = arith.constant 0 : index
    %c0_11 = arith.constant 0 : index
    %13 = vector.load %arg6[%c0_10, %c0_11] : memref<64x128xf32, #tpu.memory_space<vmem>>, vector<64x128xf32>
    %cst_12 = arith.constant dense<0.000000e+00> : vector<8x128xf32>
    %14 = tpu.matmul %12, %13, %cst_12 {dimension_numbers = #tpu.dot_dimension_numbers<[1], [0], [0], [1], [0, 0, 1, 1], [], []>} : vector<8x64xf32>, vector<64x128xf32>, vector<8x128xf32> -> vector<8x128xf32>
    %c0_13 = arith.constant 0 : index
    %c0_14 = arith.constant 0 : index
    %15 = vector.load %arg7[%c0_13, %c0_14] : memref<1x128xf32, #tpu.memory_space<vmem>>, vector<1x128xf32>
    %16 = vector.broadcast %15 : vector<1x128xf32> to vector<8x128xf32>
    %17 = arith.addf %14, %16 : vector<8x128xf32>
    %c0_15 = arith.constant 0 : index
    %c0_16 = arith.constant 0 : index
    %18 = vector.load %arg8[%c0_15, %c0_16] : memref<8x128xf32, #tpu.memory_space<vmem>>, vector<8x128xf32>
    tpu.vector_store %arg8[%c0_15, %c0_16], %17 {strides = array<i32>} : memref<8x128xf32, #tpu.memory_space<vmem>>, vector<8x128xf32>,
    return
  }
  func.func @transform_0(%arg0: i32) -> (i32, i32) {
    %c0_i32 = arith.constant 0 : i32
    %c0_i32_0 = arith.constant 0 : i32
    return %arg0, %c0_i32 : i32, i32
  }
  func.func @transform_1(%arg0: i32) -> (i32, i32) {
    %c0_i32 = arith.constant 0 : i32
    %c0_i32_0 = arith.constant 0 : i32
    %c0_i32_1 = arith.constant 0 : i32
    return %c0_i32, %c0_i32_0 : i32, i32
  }
  func.func @transform_2(%arg0: i32) -> (i32, i32) {
    %c0_i32 = arith.constant 0 : i32
    %c0_i32_0 = arith.constant 0 : i32
    %c0_i32_1 = arith.constant 0 : i32
    return %c0_i32, %c0_i32_0 : i32, i32
  }
  func.func @transform_3(%arg0: i32) -> (i32, i32) {
    %c0_i32 = arith.constant 0 : i32
    %c0_i32_0 = arith.constant 0 : i32
    %c0_i32_1 = arith.constant 0 : i32
    return %c0_i32, %c0_i32_0 : i32, i32
  }
  func.func @transform_4(%arg0: i32) -> (i32, i32) {
    %c0_i32 = arith.constant 0 : i32
    %c0_i32_0 = arith.constant 0 : i32
    %c0_i32_1 = arith.constant 0 : i32
    return %c0_i32, %c0_i32_0 : i32, i32
  }
  func.func @transform_5(%arg0: i32) -> (i32, i32) {
    %c0_i32 = arith.constant 0 : i32
    %c0_i32_0 = arith.constant 0 : i32
    %c0_i32_1 = arith.constant 0 : i32
    return %c0_i32, %c0_i32_0 : i32, i32
  }
  func.func @transform_6(%arg0: i32) -> (i32, i32) {
    %c0_i32 = arith.constant 0 : i32
    %c0_i32_0 = arith.constant 0 : i32
    %c0_i32_1 = arith.constant 0 : i32
    return %c0_i32, %c0_i32_0 : i32, i32
  }
  func.func @transform_7(%arg0: i32) -> (i32, i32) {
    %c0_i32 = arith.constant 0 : i32
    %c0_i32_0 = arith.constant 0 : i32
    return %arg0, %c0_i32 : i32, i32
  }
}

</mosaic_0001>

<bundles_post_ra>
// kernel: tpu_custom_call.1
= control target key start
LH: loop header
LB: loop body
LE: loop exit
PB: predicated region body
PF: predicated region fallthrough
CT: control target
= control target key end

     0   :  { %12 = vsyncpa [#allocation3], 0  ;;  %s659_s0 = inlined_call_operand.hbm [shape: f32[8,16], index: 0, kind: input, shape index: {}]   ;;  %s660_s1 = inlined_call_operand.hbm [shape: f32[16,64], index: 1, kind: input, shape index: {}]   ;;  %s661_s2 = inlined_call_operand.vmem [shape: f32[1,64], index: 2, kind: input, shape index: {}]   ;;  %s662_s3 = inlined_call_operand.hbm [shape: f32[64,64], index: 3, kind: input, shape index: {}]   ;;  %s663_s4 = inlined_call_operand.vmem [shape: f32[1,64], index: 4, kind: input, shape index: {}]   ;;  %s664_s5 = inlined_call_operand.hbm [shape: f32[64,128], index: 5, kind: input, shape index: {}]   ;;  %s665_s6 = inlined_call_operand.vmem [shape: f32[1,128], index: 6, kind: input, shape index: {}]   ;;  %s666_s7 = inlined_call_operand.hbm [shape: f32[8,128], index: 7, kind: output, shape index: {}]  }
   0x1   :  { %13 = vsyncpa [#allocation6], 0 }
   0x2   :  { %14 = vsyncpa [#allocation9], 0 }
   0x3   :  { %15 = vsyncpa [#allocation4], 0  ;;  %s554_s24 = smov [#allocation5]  }
   0x4   :  { %s31_s25 = sshll.u32 %s554_s24, 4  ;;  %s32_s25 = int_to_ptr.vmem [resolvable:$true] %s31_s25 }
   0x5   :  { %s454_s26 = scalar_lea.vmem %s32_s25, 256  ;;  %p459_p1 = scmp.lt.s32.totalorder %s32_s25, %s32_s25 }
   0x6   :  { %p455_p0 = scmp.ne.s32.totalorder %s32_s25, %s454_s26  ;;  %p460_p2 = scmp.lt.s32.totalorder %s454_s26, %s454_s26 }
   0x8   :  { %p461_p3 = por %p460_p2, %p459_p1 }
   0xa   :  { %p462_p4 = pnand %p461_p3, %p455_p0 }
   0xc   :  { %465 = shalt.err (!%p462_p4)
}
   0xd   :  { %s555_s27 = smov 128   ;;  %s556_s28 = smov 8  }
   0xe   :  { %37 = dma.hbm_to_vmem [thread:$0]  %s660_s1, 256, %s32_s25, [#allocation6], %s555_s27, %s555_s27, %s556_s28  }
   0xf   :  { %s557_s8 = smov [#allocation2]   ;;  %s558_s10 = smov [#allocation7]  }
  0x10   :  { %s22_s9 = sshll.u32 %s557_s8, 4  ;;  %s45_s11 = sshll.u32 %s558_s10, 4  ;;  %s23_s9 = int_to_ptr.vmem [resolvable:$true] %s22_s9  ;;  %s46_s11 = int_to_ptr.vmem [resolvable:$true] %s45_s11 }
  0x11   :  { %s474_s12 = scalar_lea.vmem %s23_s9, 128  ;;  %p479_p6 = scmp.lt.s32.totalorder %s23_s9, %s23_s9 }
  0x12   :  { %p475_p5 = scmp.ne.s32.totalorder %s23_s9, %s474_s12  ;;  %p480_p7 = scmp.lt.s32.totalorder %s474_s12, %s474_s12 }
  0x14   :  { %p481_p8 = por %p480_p7, %p479_p6 }
  0x16   :  { %p482_p9 = pnand %p481_p8, %p475_p5 }
  0x18   :  { %485 = shalt.err (!%p482_p9)
}
  0x19   :  { %25 = dma.hbm_to_vmem [thread:$0]  %s659_s0, 128, %s23_s9, [#allocation3]  }
  0x1a   :  { %s494_s15 = scalar_lea.vmem %s46_s11, 1024  ;;  %p499_p11 = scmp.lt.s32.totalorder %s46_s11, %s46_s11 }
  0x1b   :  { %p495_p10 = scmp.ne.s32.totalorder %s46_s11, %s494_s15  ;;  %p500_p12 = scmp.lt.s32.totalorder %s494_s15, %s494_s15 }
  0x1d   :  { %p501_p13 = por %p500_p12, %p499_p11 }
  0x1f   :  { %p502_p0 = pnand %p501_p13, %p495_p10 }
  0x21   :  { %505 = shalt.err (!%p502_p0)
}
  0x22   :  { %51 = dma.hbm_to_vmem [thread:$0]  %s662_s3, 1024, %s46_s11, [#allocation6], %s555_s27, %s555_s27, %s556_s28  }
  0x23   :  { %s559_s17 = smov [#allocation8]  }
  0x24   :  { %s59_s18 = sshll.u32 %s559_s17, 4  ;;  %s60_s18 = int_to_ptr.vmem [resolvable:$true] %s59_s18 }
  0x25   :  { %s514_s19 = scalar_lea.vmem %s60_s18, 1024  ;;  %p519_p2 = scmp.lt.s32.totalorder %s60_s18, %s60_s18 }
  0x26   :  { %p515_p1 = scmp.ne.s32.totalorder %s60_s18, %s514_s19  ;;  %p520_p3 = scmp.lt.s32.totalorder %s514_s19, %s514_s19 }
  0x28   :  { %p521_p4 = por %p520_p3, %p519_p2 }
  0x2a   :  { %p522_p5 = pnand %p521_p4, %p515_p1 }
  0x2c   :  { %525 = shalt.err (!%p522_p5)
}
  0x2d   :  { %65 = dma.hbm_to_vmem [thread:$0]  %s664_s5, 1024, %s60_s18, [#allocation9], %s555_s27, %s555_s27, %s556_s28  }
  0x2e   :  { %546 = dma.done.wait [#allocation3], 128  }
  0x2f   :  { %547 = vsyncadd [#allocation3], 4294967168 }
  0x30   :  { %548 = dma.done.wait [#allocation6], 1280  }
  0x31   :  { %549 = vsyncadd [#allocation6], 4294966016 }
  0x32   :  { %550 = dma.done.wait [#allocation9], 1024  }
  0x33   :  { %551 = vsyncadd [#allocation9], 4294966272  ;;  %v560_v0 = vmov 0.0   ;;  %vm561_vm0 = vmmov 0   ;;  %v82_v1 = vld [vmem:[#allocation5 + $0x8] sm:$0xff]  ;;  %v81_v2 = vld [vmem:[#allocation5] sm:$0xff] }
  0x34   :  { %388 = vmatprep.subr.mxu0 %v560_v0  ;;  %392 = vmatprep.mubr.msk.f32.mxu0 %vm561_vm0, %v560_v0  ;;  %v80_v3 = vld [vmem:[#allocation2] sm:$0xff]  ;;  %vm90_vm1 = vcmask 130048   ;;  %v172_v4 = vld [vmem:[#allocation7 + $0x38] sm:$0xff]  ;;  %v171_v5 = vld [vmem:[#allocation7 + $0x30] sm:$0xff]  ;;  %vm180_vm2 = vcmask 523264   ;;  %s562_s24 = smov [#allocation10]  }
  0x35   :  { %395 = vmatprep.subr.mxu1 %v560_v0  ;;  %411 = vmatprep.mubr.msk.f32.mxu1 %vm561_vm0, %v560_v0  ;;  %v170_v6 = vld [vmem:[#allocation7 + $0x28] sm:$0xff]  ;;  %v169_v7 = vld [vmem:[#allocation7 + $0x20] sm:$0xff]  ;;  %v168_v8 = vld [vmem:[#allocation7 + $0x18] sm:$0xff]  ;;  %s350_s25 = sshll.u32 %s562_s24, 4  ;;  %s351_s25 = int_to_ptr.vmem [resolvable:$true] %s350_s25 }
  0x36   :  { %389 = vmatpush3.msra.mxu0 %v82_v1  ;;  %396 = vmatpush3.msra.mxu1 %v172_v4  ;;  %v167_v9 = vld [vmem:[#allocation7 + $0x10] sm:$0xff]  ;;  %v166_v10 = vld [vmem:[#allocation7 + $0x8] sm:$0xff]  ;;  %v165_v11 = vld [vmem:[#allocation7] sm:$0xff]  ;;  %s526_s26 = scalar_lea.vmem %s351_s25, 128  ;;  %p531_p7 = scmp.lt.s32.totalorder %s351_s25, %s351_s25 }
  0x37   :  { %390 = vmatprep.subr.mxu0 %v560_v0  ;;  %397 = vmatprep.subr.mxu1 %v560_v0  ;;  %v361_v12 = vld [vmem:[%s661_s2] ss:$0 sm:$0xff]  ;;  %v262_v17 = vld [vmem:[#allocation8 + $0x38] sm:$0xff]  ;;  %v261_v18 = vld [vmem:[#allocation8 + $0x30] sm:$0xff]  ;;  %p527_p6 = scmp.ne.s32.totalorder %s351_s25, %s526_s26  ;;  %p532_p8 = scmp.lt.s32.totalorder %s526_s26, %s526_s26 }
  0x38   :  { %391 = vmatpush3.msra.mxu0 %v81_v2  ;;  %398 = vmatpush3.msra.mxu1 %v171_v5  ;;  %v260_v19 = vld [vmem:[#allocation8 + $0x28] sm:$0xff]  ;;  %v259_v20 = vld [vmem:[#allocation8 + $0x20] sm:$0xff]  ;;  %v258_v21 = vld [vmem:[#allocation8 + $0x18] sm:$0xff] }
  0x39   :  { %393 = vmatmul.mubr.msk.f32.vlgmr.msra.gmra.mxu0 %vm90_vm1, %v80_v3  ;;  %414 = vmatprep.subr.mxu0 %v560_v0  ;;  %v257_v22 = vld [vmem:[#allocation8 + $0x10] sm:$0xff]  ;;  %v256_v23 = vld [vmem:[#allocation8 + $0x8] sm:$0xff]  ;;  %v255_v24 = vld [vmem:[#allocation8] sm:$0xff]  ;;  %p533_p9 = por %p532_p8, %p531_p7 }
  0x3a   :  { %430 = vmatprep.mubr.msk.f32.mxu0 %vm561_vm0, %v560_v0  ;;  %399 = vmatprep.subr.mxu1 %v560_v0  ;;  %v363_v25 = vld [vmem:[%s663_s4] ss:$0 sm:$0xff] }
  0x3b   :  { %400 = vmatpush3.msra.mxu1 %v170_v6  ;;  %415 = vmatpush3.msra.mxu0 %v262_v17  ;;  %v365_v30 = vld [vmem:[%s665_s6] ss:$0 sm:$0xff]  ;;  %p534_p10 = pnand %p533_p9, %p527_p6 }
  0x3c   :  { %401 = vmatprep.subr.mxu1 %v560_v0  ;;  %416 = vmatprep.subr.mxu0 %v560_v0 }
  0x3d   :  { %402 = vmatpush3.msra.mxu1 %v169_v7  ;;  %417 = vmatpush3.msra.mxu0 %v261_v18 }
  0x3e   :  { %403 = vmatprep.subr.mxu1 %v560_v0  ;;  %418 = vmatprep.subr.mxu0 %v560_v0 }
  0x3f   :  { %404 = vmatpush3.msra.mxu1 %v168_v8  ;;  %419 = vmatpush3.msra.mxu0 %v260_v19 }
  0x40   :  { %405 = vmatprep.subr.mxu1 %v560_v0  ;;  %420 = vmatprep.subr.mxu0 %v560_v0 }
  0x41   :  { %406 = vmatpush3.msra.mxu1 %v167_v9  ;;  %421 = vmatpush3.msra.mxu0 %v259_v20 }
  0x42   :  { %407 = vmatprep.subr.mxu1 %v560_v0  ;;  %422 = vmatprep.subr.mxu0 %v560_v0 }
  0x43   :  { %408 = vmatpush3.msra.mxu1 %v166_v10  ;;  %423 = vmatpush3.msra.mxu0 %v258_v21 }
  0x44   :  { %409 = vmatprep.subr.mxu1 %v560_v0  ;;  %424 = vmatprep.subr.mxu0 %v560_v0 }
  0x45   :  { %410 = vmatpush3.msra.mxu1 %v165_v11  ;;  %425 = vmatpush3.msra.mxu0 %v257_v22 }
  0x46   :  { %426 = vmatprep.subr.mxu0 %v560_v0 }
  0x47   :  { %427 = vmatpush3.msra.mxu0 %v256_v23 }
  0x48   :  { %428 = vmatprep.subr.mxu0 %v560_v0 }
  0x49   :  { %429 = vmatpush3.msra.mxu0 %v255_v24 }
  0xf9   :  { %v160_v13 = vpop.f32.mrf.mxu0 }
  0xfa   :  { %v161_v14 = vadd.f32 %v361_v12, %v160_v13 }
  0xfb   :  { %v394_v15 = vpop.f32.mrf.mxu0 }
  0xfc   :  { %442 = vtanh.f32 %v161_v14 }
 0x109   :  { %v443_v16 = vpop.eup %442 }
 0x10a   :  { %412 = vmatmul.mubr.msk.f32.vlgmr.msra.gmra.mxu1 %vm180_vm2, %v443_v16 }
 0x1ca   :  { %v250_v26 = vpop.f32.mrf.mxu1 }
 0x1cb   :  { %v251_v27 = vadd.f32 %v363_v25, %v250_v26 }
 0x1cc   :  { %v413_v28 = vpop.f32.mrf.mxu1 }
 0x1cd   :  { %444 = vtanh.f32 %v251_v27 }
 0x1da   :  { %v445_v29 = vpop.eup %444 }
 0x1db   :  { %431 = vmatmul.mubr.msk.f32.vlgmr.msra.gmra.mxu0 %vm180_vm2, %v445_v29 }
 0x29b   :  { %v339_v31 = vpop.f32.mrf.mxu0 }
 0x29c   :  { %v340_v32 = vadd.f32 %v365_v30, %v339_v31 }
 0x29d   :  { %v432_v33 = vpop.f32.mrf.mxu0 }
 0x29e   :  { %343 = vst [vmem:[#allocation10] sm:$0xff] %v340_v32 }
 0x29f   :  { %537 = shalt.err (!%p534_p10)
}
 0x2a0   :  { %353 = dma.vmem_to_hbm [thread:$0]  %s351_s25, 128, %s666_s7, [#allocation4]  }
 0x2a1   :  { %552 = dma.done.wait [#allocation4], 128  }
 0x2a2   :  { %553 = vsyncadd [#allocation4], 4294967168 }
 0x2a3   :  { %357 = vsyncpa [#allocation3], 1 }
 0x2a4   :  { %358 = vsyncpa [#allocation6], 1 }
 0x2a5   :  { %359 = vsyncpa [#allocation9], 1 }
 0x2a6   :  { %360 = vsyncpa [#allocation4], 1 }

</bundles_post_ra>
